<compile_context>
chip_gen: v7x
topology: tpu7x:2x2x1
jax: 0.10.0
libtpu: 0.0.40
codegen_flags: <defaults>
</compile_context>

<pallas_src>
import math

import jax
import jax.numpy as jnp
from jax.experimental import pallas as pl
from jax.experimental.pallas import tpu as pltpu


# ----------------------------------------------------------------------------
# Small helpers
# ----------------------------------------------------------------------------
def _round_up(x: int, m: int) -> int:
    return ((x + m - 1) // m) * m


def _sublane(dtype) -> int:
    # f32 -> 8 rows per native tile, bf16 -> 16, int8/fp8 -> 32.
    return max(8, 32 // jnp.dtype(dtype).itemsize)


def _gen_params() -> dict:
    """Generation-aware VMEM budget and tile caps."""
    kind = ""
    try:
        dev = jax.devices()[0]
        if dev.platform == "tpu":
            kind = dev.device_kind.lower()
    except Exception:
        pass
    if "v7" in kind or "7x" in kind:
        # 64 MiB VMEM per TensorCore, 2 TCs per chip -> keep >=2 parallel blocks.
        return dict(vmem_limit=48 * 1024 * 1024, tm_max=512, tk_max=512,
                    tn_max=1024, min_row_blocks=2)
    if any(v in kind for v in ("v4", "v5", "v6")):
        # 128 MiB VMEM, single TensorCore per chip.
        return dict(vmem_limit=96 * 1024 * 1024, tm_max=1024, tk_max=1024,
                    tn_max=1024, min_row_blocks=1)
    # Unknown / older generations: stay conservative.
    return dict(vmem_limit=32 * 1024 * 1024, tm_max=256, tk_max=512,
                tn_max=512, min_row_blocks=1)


def _choose_row_tiling(dim: int, t_max: int, sublane: int, min_blocks: int):
    """Tile the M (row / 'parallel') dimension.

    Returns (tile, padded_dim).  Pads only to the sublane quantum (times the
    number of blocks), never up to a full oversized tile.
    """
    if dim <= t_max and min_blocks <= 1:
        return dim, dim                      # one full-extent block, no padding
    n_blocks = max(min_blocks, -(-dim // t_max))
    t = _round_up(-(-dim // n_blocks), sublane)
    t = min(t, _round_up(dim, sublane))
    padded = _round_up(dim, t)
    return t, padded


def _choose_col_tiling(dim: int, t_max: int):
    """Tile a lane-major (last-dim / reduction) dimension.

    Full-extent block when it fits; otherwise a multiple of 128 chosen to
    minimize zero padding (tie-break: larger tile).
    """
    if dim <= t_max:
        return dim, dim
    best_t, best_p = 128, _round_up(dim, 128)
    t = 128
    while t <= t_max:
        p = _round_up(dim, t)
        if p < best_p or (p == best_p and t > best_t):
            best_t, best_p = t, p
        t += 128
    return best_t, best_p


def _pad2(a, rows: int, cols: int):
    r, c = a.shape
    if rows == r and cols == c:
        return a
    return jnp.pad(a, ((0, rows - r), (0, cols - c)))


# ----------------------------------------------------------------------------
# Kernels
# ----------------------------------------------------------------------------
def _make_matmul_kernel(has_bias: bool):
    """out = a @ b (+ bias), tiled over (i, j, k); f32 VMEM accumulator."""

    def _step(a_ref, b_ref, bias_ref, o_ref, acc_ref):
        @pl.when(pl.program_id(2) == 0)
        def _():
            acc_ref[...] = jnp.zeros_like(acc_ref)

        acc_ref[...] += jnp.dot(a_ref[...], b_ref[...],
                                preferred_element_type=jnp.float32)

        @pl.when(pl.program_id(2) == pl.num_programs(2) - 1)
        def _():
            res = acc_ref[...]
            if has_bias:
                res = res + bias_ref[...]
            o_ref[...] = res.astype(o_ref.dtype)

    if has_bias:
        def kernel(a_ref, b_ref, bias_ref, o_ref, acc_ref):
            _step(a_ref, b_ref, bias_ref, o_ref, acc_ref)
    else:
        def kernel(a_ref, b_ref, o_ref, acc_ref):
            _step(a_ref, b_ref, None, o_ref, acc_ref)
    return kernel


def _make_fused_gcn_kernel(has_bias: bool):
    """out = (adj @ x) @ W (+ bias), tiled over (i, k).

    adj tile: (tm, tk); x tile: (tk, in_f); W resident: (in_f, out_f).
    The k-loop accumulates adj @ x in an f32 scratch; the epilogue applies W
    and the bias, so the intermediate never touches HBM.
    """

    def _step(a_ref, x_ref, w_ref, bias_ref, o_ref, acc_ref):
        @pl.when(pl.program_id(1) == 0)
        def _():
            acc_ref[...] = jnp.zeros_like(acc_ref)

        acc_ref[...] += jnp.dot(a_ref[...], x_ref[...],
                                preferred_element_type=jnp.float32)

        @pl.when(pl.program_id(1) == pl.num_programs(1) - 1)
        def _():
            res = jnp.dot(acc_ref[...].astype(w_ref.dtype), w_ref[...],
                          preferred_element_type=jnp.float32)
            if has_bias:
                res = res + bias_ref[...]
            o_ref[...] = res.astype(o_ref.dtype)

    if has_bias:
        def kernel(a_ref, x_ref, w_ref, bias_ref, o_ref, acc_ref):
            _step(a_ref, x_ref, w_ref, bias_ref, o_ref, acc_ref)
    else:
        def kernel(a_ref, x_ref, w_ref, o_ref, acc_ref):
            _step(a_ref, x_ref, w_ref, None, o_ref, acc_ref)
    return kernel


# ----------------------------------------------------------------------------
# Wrappers
# ----------------------------------------------------------------------------
def _tiled_matmul(a, b, bias_row, out_dtype, params):
    """out = a @ b (+ bias_row), generic tiled kernel.

    a: [M, K], b: [K, N], bias_row: [1, N] float32 or None.
    """
    M, K = a.shape
    K2, Ncols = b.shape
    assert K == K2

    tm, Mp = _choose_row_tiling(M, params["tm_max"], _sublane(a.dtype),
                                params["min_row_blocks"])
    tk, Kp = _choose_col_tiling(K, params["tk_max"])
    tn, Np = _choose_col_tiling(Ncols, params["tn_max"])

    a_p = _pad2(a, Mp, Kp)
    b_p = _pad2(b, Kp, Np)

    has_bias = bias_row is not None
    in_specs = [
        pl.BlockSpec((tm, tk), lambda i, j, k: (i, k)),
        pl.BlockSpec((tk, tn), lambda i, j, k: (k, j)),
    ]
    args = [a_p, b_p]
    if has_bias:
        in_specs.append(pl.BlockSpec((1, tn), lambda i, j, k: (0, j)))
        args.append(_pad2(bias_row, 1, Np))

    grid = (Mp // tm, Np // tn, Kp // tk)

    out_p = pl.pallas_call(
        _make_matmul_kernel(has_bias),
        out_shape=jax.ShapeDtypeStruct((Mp, Np), out_dtype),
        grid_spec=pltpu.PrefetchScalarGridSpec(
            num_scalar_prefetch=0,
            grid=grid,
            in_specs=in_specs,
            out_specs=pl.BlockSpec((tm, tn), lambda i, j, k: (i, j)),
            scratch_shapes=[pltpu.VMEM((tm, tn), jnp.float32)],
        ),
        compiler_params=pltpu.CompilerParams(
            dimension_semantics=("parallel", "parallel", "arbitrary"),
            vmem_limit_bytes=params["vmem_limit"],
        ),
    )(*args)

    if Mp != M or Np != Ncols:
        out_p = out_p[:M, :Ncols]
    return out_p


def _fused_gcn(adj, x, weight, bias_row, out_dtype, params):
    """out = (adj @ x) @ W (+ bias) in a single pallas_call."""
    Nn = adj.shape[0]
    in_f = x.shape[1]
    out_f = weight.shape[1]

    tm, Mp = _choose_row_tiling(Nn, params["tm_max"], _sublane(adj.dtype),
                                params["min_row_blocks"])
    tk, Kp = _choose_col_tiling(Nn, params["tk_max"])

    adj_p = _pad2(adj, Mp, Kp)
    x_p = _pad2(x, Kp, in_f)

    has_bias = bias_row is not None
    in_specs = [
        pl.BlockSpec((tm, tk), lambda i, k: (i, k)),       # adj tile
        pl.BlockSpec((tk, in_f), lambda i, k: (k, 0)),     # x rows for this k
        pl.BlockSpec((in_f, out_f), lambda i, k: (0, 0)),  # W resident in VMEM
    ]
    args = [adj_p, x_p, weight]
    if has_bias:
        in_specs.append(pl.BlockSpec((1, out_f), lambda i, k: (0, 0)))
        args.append(bias_row)

    grid = (Mp // tm, Kp // tk)

    out_p = pl.pallas_call(
        _make_fused_gcn_kernel(has_bias),
        out_shape=jax.ShapeDtypeStruct((Mp, out_f), out_dtype),
        grid_spec=pltpu.PrefetchScalarGridSpec(
            num_scalar_prefetch=0,
            grid=grid,
            in_specs=in_specs,
            out_specs=pl.BlockSpec((tm, out_f), lambda i, k: (i, 0)),
            scratch_shapes=[pltpu.VMEM((tm, in_f), jnp.float32)],
        ),
        compiler_params=pltpu.CompilerParams(
            dimension_semantics=("parallel", "arbitrary"),
            vmem_limit_bytes=params["vmem_limit"],
        ),
    )(*args)

    if Mp != Nn:
        out_p = out_p[:Nn]
    return out_p


def graph_convolution1(x, adj, weight, bias=None, compute_dtype=None):
    """Pallas implementation of GraphConvolution1.forward.

    x:      [N, in_features]
    adj:    [N, N] (dense adjacency; torch.spmm(adj, s) == adj @ s)
    weight: [in_features, out_features]
    bias:   [out_features] or None
    compute_dtype: optionally cast matmul inputs (e.g. jnp.bfloat16 on
        v5e/v6e/v7x) -- halves adj HBM traffic; accumulation stays f32.
        Default None keeps exact f32 semantics of the PyTorch module.
    """
    n, in_f = x.shape
    out_f = weight.shape[1]
    assert adj.shape == (n, n)
    assert weight.shape[0] == in_f

    out_dtype = x.dtype
    if compute_dtype is not None:
        x = x.astype(compute_dtype)
        adj = adj.astype(compute_dtype)
        weight = weight.astype(compute_dtype)

    params = _gen_params()
    bias_row = None if bias is None else bias.reshape(1, out_f).astype(jnp.float32)

    # Fused path: (adj @ x) @ W with W resident in VMEM.  Valid algebraically
    # whenever we reassociate; profitable when in_f <= out_f (the N^2 matmul
    # then runs over the smaller feature dim) and the feature dims are small
    # enough to keep the whole weight + accumulator in VMEM.
    if in_f <= out_f and in_f <= 512 and out_f <= params["tn_max"]:
        return _fused_gcn(adj, x, weight, bias_row, out_dtype, params)

    if in_f <= out_f:
        # Features too large to keep W resident: (adj @ x) @ W in two passes.
        t = _tiled_matmul(adj, x, None, x.dtype, params)
        return _tiled_matmul(t, weight, bias_row, out_dtype, params)

    # adj @ (x @ W): precompute support once, then the big N^2 matmul with the
    # bias fused into its epilogue.
    support = _tiled_matmul(x, weight, None, x.dtype, params)
    return _tiled_matmul(adj, support, bias_row, out_dtype, params)


# ----------------------------------------------------------------------------
# Self-test
# ----------------------------------------------------------------------------
if __name__ == "__main__":
    HI = jax.lax.Precision.HIGHEST

    # ---- Toy shape consistent with the module (in_f <= out_f: fused path) ----
    key = jax.random.PRNGKey(0)
    k_x, k_adj, k_w, k_b = jax.random.split(key, 4)
    N, IN_F, OUT_F = 8, 16, 32
    stdv = 1.0 / math.sqrt(OUT_F)
    weight = jax.random.uniform(k_w, (IN_F, OUT_F), dtype=jnp.float32,
                                minval=-stdv, maxval=stdv)
    bias = jax.random.uniform(k_b, (OUT_F,), dtype=jnp.float32,
                              minval=-stdv, maxval=stdv)
    x = jax.random.normal(k_x, (N, IN_F), dtype=jnp.float32)
    adj = jax.random.uniform(k_adj, (N, N), dtype=jnp.float32)
    adj = adj / jnp.sum(adj, axis=1, keepdims=True)

    out = jax.block_until_ready(graph_convolution1(x, adj, weight, bias))
    ref = jnp.dot(adj, jnp.dot(x, weight, precision=HI), precision=HI) + bias
    assert out.shape == (N, OUT_F)
    assert jnp.allclose(out, ref, atol=2e-4, rtol=2e-4)

    # ---- Larger / unaligned shape (in_f > out_f: two-pass path, exercises
    #      multi-block rows on v7x, padding + slicing, bias at finalize). ----
    N2, IN2, OUT2 = 300, 96, 48
    k_x2, k_adj2, k_w2, k_b2 = jax.random.split(jax.random.PRNGKey(1), 4)
    stdv2 = 1.0 / math.sqrt(OUT2)
    w2 = jax.random.uniform(k_w2, (IN2, OUT2), dtype=jnp.float32,
                            minval=-stdv2, maxval=stdv2)
    b2 = jax.random.uniform(k_b2, (OUT2,), dtype=jnp.float32,
                            minval=-stdv2, maxval=stdv2)
    x2 = jax.random.normal(k_x2, (N2, IN2), dtype=jnp.float32)
    adj2 = jax.random.uniform(k_adj2, (N2, N2), dtype=jnp.float32)
    adj2 = adj2 / jnp.sum(adj2, axis=1, keepdims=True)

    out2 = jax.block_until_ready(graph_convolution1(x2, adj2, w2, b2))
    ref2 = jnp.dot(adj2, jnp.dot(x2, w2, precision=HI), precision=HI) + b2
    assert out2.shape == (N2, OUT2)
    assert jnp.allclose(out2, ref2, atol=2e-4, rtol=2e-4)

    # ---- No-bias path (module supports bias=False). ----
    out3 = jax.block_until_ready(graph_convolution1(x, adj, weight, None))
    ref3 = jnp.dot(adj, jnp.dot(x, weight, precision=HI), precision=HI)
    assert jnp.allclose(out3, ref3, atol=2e-4, rtol=2e-4)

    # ---- Optional bf16 compute path (f32 accumulation, looser tolerance). ----
    out4 = jax.block_until_ready(
        graph_convolution1(x2, adj2, w2, b2, compute_dtype=jnp.bfloat16))
    assert out4.dtype == jnp.float32
    assert jnp.allclose(out4, ref2, atol=3e-2, rtol=5e-2)

    print("KERNEL_OK")
</pallas_src>

<mosaic_0001>
module attributes {stable_mosaic.version = 11 : i64} {
  func.func @kernel(%arg0: i32, %arg1: i32, %arg2: memref<8x8xf32, #tpu.memory_space<vmem>>, %arg3: memref<8x16xf32, #tpu.memory_space<vmem>>, %arg4: memref<16x32xf32, #tpu.memory_space<vmem>>, %arg5: memref<1x32xf32, #tpu.memory_space<vmem>>, %arg6: memref<8x32xf32, #tpu.memory_space<vmem>>, %arg7: memref<8x16xf32, #tpu.memory_space<vmem>>) attributes {dimension_semantics = [#tpu.dimension_semantics<parallel>, #tpu.dimension_semantics<arbitrary>], iteration_bounds = array<i64: 1, 1>, scalar_prefetch = 0 : i64, scratch_operands = 1 : i64, tpu.core_type = #tpu.core_type<tc>, window_params = [{transform_indices = @transform_0, window_bounds = array<i64: 8, 8>}, {transform_indices = @transform_1, window_bounds = array<i64: 8, 16>}, {pipeline_mode = #tpu.pipeline_mode<synchronous>, transform_indices = @transform_2, window_bounds = array<i64: 16, 32>}, {pipeline_mode = #tpu.pipeline_mode<synchronous>, transform_indices = @transform_3, window_bounds = array<i64: 1, 32>}, {transform_indices = @transform_4, window_bounds = array<i64: 8, 32>}]} {
    %c0_i32 = arith.constant 0 : i32
    %0 = arith.cmpi eq, %arg1, %c0_i32 : i32
    %1 = arith.extui %0 : i1 to i32
    %c0_i32_0 = arith.constant 0 : i32
    %2 = arith.cmpi ne, %1, %c0_i32_0 : i32
    scf.if %2 {
      %cst_10 = arith.constant 0.000000e+00 : f32
      %12 = vector.broadcast %cst_10 : f32 to vector<8x16xf32>
      %c0_11 = arith.constant 0 : index
      %c0_12 = arith.constant 0 : index
      %13 = vector.load %arg7[%c0_11, %c0_12] : memref<8x16xf32, #tpu.memory_space<vmem>>, vector<8x16xf32>
      tpu.vector_store %arg7[%c0_11, %c0_12], %12 {strides = array<i32>} : memref<8x16xf32, #tpu.memory_space<vmem>>, vector<8x16xf32>,
    } else {
    }
    %c0 = arith.constant 0 : index
    %c0_1 = arith.constant 0 : index
    %3 = vector.load %arg7[%c0, %c0_1] : memref<8x16xf32, #tpu.memory_space<vmem>>, vector<8x16xf32>
    %c0_2 = arith.constant 0 : index
    %c0_3 = arith.constant 0 : index
    %4 = vector.load %arg2[%c0_2, %c0_3] : memref<8x8xf32, #tpu.memory_space<vmem>>, vector<8x8xf32>
    %c0_4 = arith.constant 0 : index
    %c0_5 = arith.constant 0 : index
    %5 = vector.load %arg3[%c0_4, %c0_5] : memref<8x16xf32, #tpu.memory_space<vmem>>, vector<8x16xf32>
    %cst = arith.constant dense<0.000000e+00> : vector<8x16xf32>
    %6 = tpu.matmul %4, %5, %cst {dimension_numbers = #tpu.dot_dimension_numbers<[1], [0], [0], [1], [0, 0, 1, 1], [], []>} : vector<8x8xf32>, vector<8x16xf32>, vector<8x16xf32> -> vector<8x16xf32>
    %7 = arith.addf %3, %6 : vector<8x16xf32>
    %c0_6 = arith.constant 0 : index
    %c0_7 = arith.constant 0 : index
    %8 = vector.load %arg7[%c0_6, %c0_7] : memref<8x16xf32, #tpu.memory_space<vmem>>, vector<8x16xf32>
    tpu.vector_store %arg7[%c0_6, %c0_7], %7 {strides = array<i32>} : memref<8x16xf32, #tpu.memory_space<vmem>>, vector<8x16xf32>,
    %c0_i32_8 = arith.constant 0 : i32
    %9 = arith.cmpi eq, %arg1, %c0_i32_8 : i32
    %10 = arith.extui %9 : i1 to i32
    %c0_i32_9 = arith.constant 0 : i32
    %11 = arith.cmpi ne, %10, %c0_i32_9 : i32
    scf.if %11 {
      %c0_10 = arith.constant 0 : index
      %c0_11 = arith.constant 0 : index
      %12 = vector.load %arg7[%c0_10, %c0_11] : memref<8x16xf32, #tpu.memory_space<vmem>>, vector<8x16xf32>
      %c0_12 = arith.constant 0 : index
      %c0_13 = arith.constant 0 : index
      %13 = vector.load %arg4[%c0_12, %c0_13] : memref<16x32xf32, #tpu.memory_space<vmem>>, vector<16x32xf32>
      %cst_14 = arith.constant dense<0.000000e+00> : vector<8x32xf32>
      %14 = tpu.matmul %12, %13, %cst_14 {dimension_numbers = #tpu.dot_dimension_numbers<[1], [0], [0], [1], [0, 0, 1, 1], [], []>} : vector<8x16xf32>, vector<16x32xf32>, vector<8x32xf32> -> vector<8x32xf32>
      %c0_15 = arith.constant 0 : index
      %c0_16 = arith.constant 0 : index
      %15 = vector.load %arg5[%c0_15, %c0_16] : memref<1x32xf32, #tpu.memory_space<vmem>>, vector<1x32xf32>
      %16 = vector.broadcast %15 : vector<1x32xf32> to vector<8x32xf32>
      %17 = arith.addf %14, %16 : vector<8x32xf32>
      %c0_17 = arith.constant 0 : index
      %c0_18 = arith.constant 0 : index
      %18 = vector.load %arg6[%c0_17, %c0_18] : memref<8x32xf32, #tpu.memory_space<vmem>>, vector<8x32xf32>
      tpu.vector_store %arg6[%c0_17, %c0_18], %17 {strides = array<i32>} : memref<8x32xf32, #tpu.memory_space<vmem>>, vector<8x32xf32>,
    } else {
    }
    return
  }
  func.func @transform_0(%arg0: i32, %arg1: i32) -> (i32, i32) {
    %c0_i32 = arith.constant 0 : i32
    return %arg0, %arg1 : i32, i32
  }
  func.func @transform_1(%arg0: i32, %arg1: i32) -> (i32, i32) {
    %c0_i32 = arith.constant 0 : i32
    %c0_i32_0 = arith.constant 0 : i32
    return %arg1, %c0_i32 : i32, i32
  }
  func.func @transform_2(%arg0: i32, %arg1: i32) -> (i32, i32) {
    %c0_i32 = arith.constant 0 : i32
    %c0_i32_0 = arith.constant 0 : i32
    %c0_i32_1 = arith.constant 0 : i32
    return %c0_i32, %c0_i32_0 : i32, i32
  }
  func.func @transform_3(%arg0: i32, %arg1: i32) -> (i32, i32) {
    %c0_i32 = arith.constant 0 : i32
    %c0_i32_0 = arith.constant 0 : i32
    %c0_i32_1 = arith.constant 0 : i32
    return %c0_i32, %c0_i32_0 : i32, i32
  }
  func.func @transform_4(%arg0: i32, %arg1: i32) -> (i32, i32) {
    %c0_i32 = arith.constant 0 : i32
    %c0_i32_0 = arith.constant 0 : i32
    return %arg0, %c0_i32 : i32, i32
  }
}

</mosaic_0001>

<bundles_post_ra>
// kernel: tpu_custom_call.1
= control target key start
LH: loop header
LB: loop body
LE: loop exit
PB: predicated region body
PF: predicated region fallthrough
CT: control target
= control target key end

     0   :  { %9 = vsyncpa [#allocation4], 0  ;;  %s459_s0 = inlined_call_operand.hbm [shape: f32[8,8], index: 0, kind: input, shape index: {}]   ;;  %s460_s1 = inlined_call_operand.hbm [shape: f32[8,16], index: 1, kind: input, shape index: {}]   ;;  %s461_s2 = inlined_call_operand.hbm [shape: f32[16,32], index: 2, kind: input, shape index: {}]   ;;  %s462_s3 = inlined_call_operand.vmem [shape: f32[1,32], index: 3, kind: input, shape index: {}]   ;;  %s463_s4 = inlined_call_operand.hbm [shape: f32[8,32], index: 4, kind: output, shape index: {}]  }
   0x1   :  { %10 = vsyncpa [#allocation7], 0 }
   0x2   :  { %11 = vsyncpa [#allocation5], 0  ;;  %s371_s15 = smov [#allocation6]   ;;  %s372_s17 = smov [#allocation3]  }
   0x3   :  { %s28_s16 = sshll.u32 %s371_s15, 4  ;;  %s18_s18 = sshll.u32 %s372_s17, 4  ;;  %s29_s16 = int_to_ptr.vmem [resolvable:$true] %s28_s16  ;;  %s19_s18 = int_to_ptr.vmem [resolvable:$true] %s18_s18 }
   0x4   :  { %s277_s21 = scalar_lea.hbm %s460_s1, 128 }
   0x5   :  { %p278_p0 = scmp.ne.s32.totalorder %s460_s1, %s277_s21  ;;  %p281_p1 = scmp.lt.u32.totalorder %s277_s21, %s460_s1 }
   0x7   :  { %p283_p2 = pnand %p281_p1, %p278_p0 }
   0x9   :  { %286 = shalt.err (!%p283_p2)
}
   0xa   :  { %s287_s26 = scalar_lea.vmem %s29_s16, 128  ;;  %p292_p4 = scmp.lt.s32.totalorder %s29_s16, %s29_s16 }
   0xb   :  { %p288_p3 = scmp.ne.s32.totalorder %s29_s16, %s287_s26  ;;  %p293_p5 = scmp.lt.s32.totalorder %s287_s26, %s287_s26 }
   0xd   :  { %p294_p6 = por %p293_p5, %p292_p4 }
   0xf   :  { %p295_p7 = pnand %p294_p6, %p288_p3 }
  0x11   :  { %298 = shalt.err (!%p295_p7)
}
  0x12   :  { %31 = dma.hbm_to_vmem [thread:$0]  %s460_s1, 128, %s29_s16, [#allocation7]  }
  0x13   :  { %s299_s5 = scalar_lea.hbm %s459_s0, 128 }
  0x14   :  { %p300_p8 = scmp.ne.s32.totalorder %s459_s0, %s299_s5  ;;  %p303_p9 = scmp.lt.u32.totalorder %s299_s5, %s459_s0 }
  0x16   :  { %p305_p10 = pnand %p303_p9, %p300_p8 }
  0x18   :  { %308 = shalt.err (!%p305_p10)
}
  0x19   :  { %s309_s10 = scalar_lea.vmem %s19_s18, 128  ;;  %p314_p12 = scmp.lt.s32.totalorder %s19_s18, %s19_s18 }
  0x1a   :  { %p310_p11 = scmp.ne.s32.totalorder %s19_s18, %s309_s10  ;;  %p315_p13 = scmp.lt.s32.totalorder %s309_s10, %s309_s10 }
  0x1c   :  { %p316_p0 = por %p315_p13, %p314_p12 }
  0x1e   :  { %p317_p1 = pnand %p316_p0, %p310_p11 }
  0x20   :  { %320 = shalt.err (!%p317_p1)
}
  0x21   :  { %21 = dma.hbm_to_vmem [thread:$0]  %s459_s0, 128, %s19_s18, [#allocation4]  }
  0x22   :  { %s373_s12 = smov [#allocation8]   ;;  %s321_s16 = scalar_lea.hbm %s461_s2, 256 }
  0x23   :  { %s37_s13 = sshll.u32 %s373_s12, 4  ;;  %p322_p2 = scmp.ne.s32.totalorder %s461_s2, %s321_s16  ;;  %s38_s13 = int_to_ptr.vmem [resolvable:$true] %s37_s13 }
  0x24   :  { %p325_p3 = scmp.lt.u32.totalorder %s321_s16, %s461_s2 }
  0x26   :  { %p327_p4 = pnand %p325_p3, %p322_p2 }
  0x28   :  { %330 = shalt.err (!%p327_p4)
}
  0x29   :  { %s331_s22 = scalar_lea.vmem %s38_s13, 256  ;;  %p336_p6 = scmp.lt.s32.totalorder %s38_s13, %s38_s13 }
  0x2a   :  { %p332_p5 = scmp.ne.s32.totalorder %s38_s13, %s331_s22  ;;  %p337_p7 = scmp.lt.s32.totalorder %s331_s22, %s331_s22 }
  0x2c   :  { %p338_p8 = por %p337_p7, %p336_p6 }
  0x2e   :  { %p339_p9 = pnand %p338_p8, %p332_p5 }
  0x30   :  { %342 = shalt.err (!%p339_p9)
}
  0x31   :  { %s374_s0 = smov 128   ;;  %s375_s18 = smov 8  }
  0x32   :  { %43 = dma.hbm_to_vmem [thread:$0]  %s461_s2, 256, %s38_s13, [#allocation7], %s374_s0, %s374_s0, %s375_s18  }
  0x33   :  { %365 = dma.done.wait [#allocation4], 128  }
  0x34   :  { %366 = vsyncadd [#allocation4], 4294967168 }
  0x35   :  { %367 = dma.done.wait [#allocation7], 384  }
  0x36   :  { %368 = vsyncadd [#allocation7], 4294966912  ;;  %vm59_vm0 = vcmask 130048   ;;  %v376_v0 = vmov 0.0   ;;  %vm377_vm1 = vmmov 0   ;;  %vm64_vm2 = vcmask 64512  }
  0x37   :  { %253 = vmatprep.subr.mxu0 %v376_v0  ;;  %255 = vmatprep.mubr.msk.f32.mxu0 %vm377_vm1, %v376_v0  ;;  %60 = vst.msk [vmem:[#allocation2] sm:$0xff] %vm59_vm0, %v376_v0  ;;  %v63_v1 = vld [vmem:[#allocation6] sm:$0xff]  ;;  %v62_v2 = vld [vmem:[#allocation3] sm:$0xff]  ;;  %v145_v3 = vld [vmem:[#allocation8] sm:$0xff]  ;;  %v378_v5 = vmov 0.0|0.0   ;;  %s379_s26 = smov [#allocation9]  }
  0x38   :  { %262 = vmatprep.mubr.msk.f32.mxu1 %vm377_vm1, %v376_v0  ;;  %254 = vmatpush3.msra.mxu0 %v63_v1  ;;  %v146_v4 = vld [vmem:[#allocation8 + $0x8] sm:$0xff]  ;;  %s235_s27 = sshll.u32 %s379_s26, 4  ;;  %vm227_vm3 = vcmask 261120   ;;  %s236_s27 = int_to_ptr.vmem [resolvable:$true] %s235_s27 }
  0x39   :  { %256 = vmatmul.mubr.msk.f32.vlgmr.msra.gmra.mrb[0].mxu0 %vm64_vm2, %v62_v2  ;;  %265 = vmatprep.subr.bf16.mxu1 %v378_v5  ;;  %v266_v6 = vpack.c.bf16 %v146_v4, %v145_v3  ;;  %v246_v12 = vld [vmem:[%s462_s3] ss:$0 sm:$0xff]  ;;  %s343_s28 = scalar_lea.vmem %s236_s27, 128  ;;  %p348_p11 = scmp.lt.s32.totalorder %s236_s27, %s236_s27 }
  0x3a   :  { %p344_p10 = scmp.ne.s32.totalorder %s236_s27, %s343_s28  ;;  %p349_p12 = scmp.lt.s32.totalorder %s343_s28, %s343_s28 }
  0x3b   :  { %267 = vmatpush3.bf16.msra.mxu1 %v266_v6 }
  0x3c   :  { %p350_p13 = por %p349_p12, %p348_p11 }
  0x3e   :  { %v61_v7 = vld [vmem:[#allocation2] sm:$0xff]  ;;  %p351_p0 = pnand %p350_p13, %p344_p10 }
 0x10c   :  { %v134_v8 = vpop.f32.mrb[0].mxu0 }
 0x10d   :  { %v138_v9 = vadd.f32 %v134_v8, %v61_v7  ;;  %v257_v10 = vpop.f32.mrb[1].mxu0 }
 0x10f   :  { %140 = vst.msk [vmem:[#allocation2] sm:$0xff] %vm59_vm0, %v138_v9 }
 0x116   :  { %v144_v11 = vld [vmem:[#allocation2] sm:$0xff] }
 0x117   :  { %263 = vmatmul.mubr.msk.f32.vlgmr.msra.gmra.mrb[0].mxu1 %vm59_vm0, %v144_v11 }
 0x1ea   :  { %v223_v13 = vpop.f32.mrb[0].mxu1 }
 0x1eb   :  { %v224_v14 = vadd.f32 %v246_v12, %v223_v13  ;;  %v264_v15 = vpop.f32.mrb[1].mxu1 }
 0x1ed   :  { %228 = vst.msk [vmem:[#allocation9] sm:$0xff] %vm227_vm3, %v224_v14 }
 0x1ee   :  { %354 = shalt.err (!%p351_p0)
}
 0x1ef   :  { %s355_s5 = scalar_lea.hbm %s463_s4, 128 }
 0x1f0   :  { %p356_p1 = scmp.ne.s32.totalorder %s463_s4, %s355_s5  ;;  %p359_p2 = scmp.lt.u32.totalorder %s355_s5, %s463_s4 }
 0x1f2   :  { %p361_p3 = pnand %p359_p2, %p356_p1 }
 0x1f4   :  { %364 = shalt.err (!%p361_p3)
}
 0x1f5   :  { %238 = dma.vmem_to_hbm [thread:$0]  %s236_s27, 128, %s463_s4, [#allocation5]  }
 0x1f6   :  { %369 = dma.done.wait [#allocation5], 128  }
 0x1f7   :  { %370 = vsyncadd [#allocation5], 4294967168 }
 0x1f8   :  { %242 = vsyncpa [#allocation4], 1 }
 0x1f9   :  { %243 = vsyncpa [#allocation7], 1 }
 0x1fa   :  { %244 = vsyncpa [#allocation5], 1 }

</bundles_post_ra>
